<compile_context>
chip_gen: v7x
topology: tpu7x:2x2x1
jax: 0.10.0
libtpu: 0.0.40
codegen_flags: <defaults>
</compile_context>

<pallas_src>
import functools

import jax
import jax.numpy as jnp
from jax.experimental import pallas as pl
from jax.experimental.pallas import tpu as pltpu


_LANE = 128                       # lane width: output / weight N-dims padded to this
_SUBLANE = 16                     # row-tile granularity (covers f32 (8) and bf16 (16))
_DEFAULT_ROW_TILE = 512           # streaming row tile
_VMEM_BUDGET = 28 * 1024 * 1024   # stay under the 32 MiB scoped-VMEM default (v7x-safe)


def _round_up(x, m):
    return (x + m - 1) // m * m


def _leaky_relu(x, slope=0.1):
    return jnp.where(x > 0, x, slope * x)


def _mlp_kernel(x_ref, w1_ref, b1_ref, w2_ref, b2_ref, o_ref):
    # x_ref : (tm, in_dim)     native dtype (streamed row tile)
    # w1_ref: (in_dim, emb_p)  native dtype, pre-transposed so y = x @ W1 + b1
    # b1_ref: (1, emb_p)       f32
    # w2_ref: (emb_p, emb_p)   native dtype, pre-transposed
    # b2_ref: (1, emb_p)       f32
    # o_ref : (tm, emb_p)      lane-dense output tile
    x = x_ref[...]

    # Layer 1: MXU matmul in native dtype with f32 accumulation; f32 epilogue.
    h = jnp.dot(x, w1_ref[...], preferred_element_type=jnp.float32)
    h = _leaky_relu(h + b1_ref[...])

    # Layer 2: feed the MXU in native dtype again (no-op cast for f32 params).
    h = h.astype(w2_ref.dtype)
    y = jnp.dot(h, w2_ref[...], preferred_element_type=jnp.float32)
    y = _leaky_relu(y + b2_ref[...])

    o_ref[...] = y.astype(o_ref.dtype)


def prepare_params(w1, b1, w2, b2):
    """Once-per-model parameter prep (torch nn.Linear layout in).

    w1: (embed, in_dim), b1: (embed,), w2: (embed, embed), b2: (embed,)
    Returns kernel-layout params: transposed to (in, out) and zero-padded so the lane
    (last) dim of the weights / biases / output is a multiple of 128.  The contraction
    dim of W1^T stays at in_dim so the input x needs no padding at all.  Biases in f32.
    """
    embed_dim, in_dim = w1.shape
    emb_p = _round_up(embed_dim, _LANE)

    w1_t = jnp.zeros((in_dim, emb_p), w1.dtype).at[:, :embed_dim].set(w1.T)
    w2_t = jnp.zeros((emb_p, emb_p), w2.dtype).at[:embed_dim, :embed_dim].set(w2.T)
    b1_p = jnp.zeros((1, emb_p), jnp.float32).at[0, :embed_dim].set(b1.astype(jnp.float32))
    b2_p = jnp.zeros((1, emb_p), jnp.float32).at[0, :embed_dim].set(b2.astype(jnp.float32))

    return dict(w1=w1_t, b1=b1_p, w2=w2_t, b2=b2_p,
                in_dim=int(in_dim), embed_dim=int(embed_dim), embed_pad=int(emb_p))


def _pick_row_tile(n_rows, in_dim, emb_p, itemsize, requested=None):
    """Largest row tile (multiple of 16) whose double-buffered x/out tiles plus the
    resident weights fit the scoped-VMEM budget; never (much) larger than N itself."""
    n_clamp = _round_up(max(n_rows, 1), _SUBLANE)
    if requested is not None:
        tm = max(_SUBLANE, _round_up(int(requested), _SUBLANE))
    else:
        tm = _DEFAULT_ROW_TILE
        in_vmem = _round_up(in_dim, _LANE)            # VMEM lane-padded footprint
        resident = 2 * ((_round_up(in_dim, 8) * emb_p + emb_p * emb_p) * itemsize
                        + 2 * emb_p * 4)

        def vmem(t):
            return 2 * t * (in_vmem + emb_p) * itemsize + resident

        while tm > _SUBLANE and vmem(tm) > _VMEM_BUDGET:
            tm //= 2
        tm = max(_SUBLANE, tm)
    return min(tm, n_clamp)


@functools.partial(jax.jit, static_argnames=("embed_dim", "tm", "single_buffer_weights"))
def _forward(tokens, w1, b1, w2, b2, *, embed_dim, tm, single_buffer_weights):
    in_dim = tokens.shape[-1]
    lead = tokens.shape[:-1]
    emb_p = w1.shape[1]

    x2d = tokens.reshape(-1, in_dim)
    n_rows = x2d.shape[0]
    grid = (pl.cdiv(n_rows, tm),)          # Pallas handles the partial boundary tile

    # Resident weights/biases: constant index_map -> single pipeline buffer if supported.
    resident = {"pipeline_mode": pl.Buffered(1)} if single_buffer_weights else {}

    out = pl.pallas_call(
        _mlp_kernel,
        out_shape=jax.ShapeDtypeStruct((n_rows, emb_p), tokens.dtype),
        grid_spec=pltpu.PrefetchScalarGridSpec(
            num_scalar_prefetch=0,
            grid=grid,
            in_specs=[
                pl.BlockSpec((tm, in_dim), lambda i: (i, 0)),                 # x (streamed)
                pl.BlockSpec((in_dim, emb_p), lambda i: (0, 0), **resident),  # W1^T
                pl.BlockSpec((1, emb_p), lambda i: (0, 0), **resident),       # b1
                pl.BlockSpec((emb_p, emb_p), lambda i: (0, 0), **resident),   # W2^T
                pl.BlockSpec((1, emb_p), lambda i: (0, 0), **resident),       # b2
            ],
            out_specs=pl.BlockSpec((tm, emb_p), lambda i: (i, 0)),            # lane-dense
        ),
        compiler_params=pltpu.CompilerParams(
            dimension_semantics=("parallel",),                                # megacore
        ),
    )(x2d, w1, b1, w2, b2)

    if emb_p != embed_dim:
        out = out[:, :embed_dim]
    return out.reshape(*lead, embed_dim)


# Module-level switch so a Buffered(1) failure only triggers one fallback, ever.
_SINGLE_BUFFER_WEIGHTS = [hasattr(pl, "Buffered")]


def multi_token_operand_embedding(tokens, params, *, block_rows=None):
    """tokens: (..., in_dim) -> (..., embed_dim); params from prepare_params()."""
    assert tokens.shape[-1] == params["in_dim"], "in_dim mismatch"
    in_dim, emb_p = params["in_dim"], params["embed_pad"]

    n_rows = 1
    for d in tokens.shape[:-1]:
        n_rows *= int(d)
    itemsize = jnp.dtype(params["w1"].dtype).itemsize
    tm = _pick_row_tile(n_rows, in_dim, emb_p, itemsize, requested=block_rows)

    args = (tokens, params["w1"], params["b1"], params["w2"], params["b2"])
    kwargs = dict(embed_dim=params["embed_dim"], tm=tm)

    if _SINGLE_BUFFER_WEIGHTS[0]:
        try:
            return _forward(*args, single_buffer_weights=True, **kwargs)
        except Exception:
            _SINGLE_BUFFER_WEIGHTS[0] = False   # fall back to default double-buffering
    return _forward(*args, single_buffer_weights=False, **kwargs)


def _reference(tokens, w1, b1, w2, b2):
    """Pure-JAX reference matching the PyTorch forward exactly."""
    h = tokens @ w1.T + b1
    h = jnp.where(h > 0, h, 0.1 * h)
    y = h @ w2.T + b2
    return jnp.where(y > 0, y, 0.1 * y)


if __name__ == "__main__":
    # Small shapes consistent with the module's forward: tokens (..., in_dim).
    batch, seq, in_dim, embed_dim = 2, 8, 16, 32

    key = jax.random.PRNGKey(0)
    k_x, k_w1, k_b1, k_w2, k_b2 = jax.random.split(key, 5)

    tokens = jax.random.normal(k_x, (batch, seq, in_dim), dtype=jnp.float32)

    # Deterministic synthetic parameters (torch nn.Linear shapes: (out, in) + (out,)).
    bound1 = 1.0 / (in_dim ** 0.5)
    bound2 = 1.0 / (embed_dim ** 0.5)
    w1 = jax.random.uniform(k_w1, (embed_dim, in_dim), jnp.float32, -bound1, bound1)
    b1 = jax.random.uniform(k_b1, (embed_dim,), jnp.float32, -bound1, bound1)
    w2 = jax.random.uniform(k_w2, (embed_dim, embed_dim), jnp.float32, -bound2, bound2)
    b2 = jax.random.uniform(k_b2, (embed_dim,), jnp.float32, -bound2, bound2)

    # Hoisted: transpose / pad ONCE per model, not per call.
    params = prepare_params(w1, b1, w2, b2)

    out = multi_token_operand_embedding(tokens, params)
    out = jax.block_until_ready(out)

    ref = _reference(tokens, w1, b1, w2, b2)
    assert out.shape == (batch, seq, embed_dim), out.shape
    assert jnp.allclose(out, ref, atol=1e-5, rtol=1e-5), "f32 mismatch vs reference"

    # bf16 smoke test: native-dtype MXU matmuls with f32 accumulation / epilogue.
    tokens_bf = tokens.astype(jnp.bfloat16)
    params_bf = prepare_params(w1.astype(jnp.bfloat16), b1, w2.astype(jnp.bfloat16), b2)
    out_bf = jax.block_until_ready(multi_token_operand_embedding(tokens_bf, params_bf))
    assert out_bf.shape == (batch, seq, embed_dim), out_bf.shape
    assert jnp.allclose(out_bf.astype(jnp.float32), ref, atol=1e-1, rtol=5e-2), \
        "bf16 mismatch vs reference"

    # Uneven-row path: leading dims not a multiple of the row tile (boundary block).
    tokens_odd = jax.random.normal(k_x, (3, 7, in_dim), dtype=jnp.float32)
    out_odd = jax.block_until_ready(multi_token_operand_embedding(tokens_odd, params))
    ref_odd = _reference(tokens_odd, w1, b1, w2, b2)
    assert out_odd.shape == (3, 7, embed_dim), out_odd.shape
    assert jnp.allclose(out_odd, ref_odd, atol=1e-5, rtol=1e-5), "odd-shape mismatch"

    print("KERNEL_OK")
</pallas_src>

<mosaic_0001>
module attributes {stable_mosaic.version = 11 : i64} {
  func.func @_mlp_kernel(%arg0: i32, %arg1: memref<16x16xf32, #tpu.memory_space<vmem>>, %arg2: memref<16x128xf32, #tpu.memory_space<vmem>>, %arg3: memref<1x128xf32, #tpu.memory_space<vmem>>, %arg4: memref<128x128xf32, #tpu.memory_space<vmem>>, %arg5: memref<1x128xf32, #tpu.memory_space<vmem>>, %arg6: memref<16x128xf32, #tpu.memory_space<vmem>>) attributes {dimension_semantics = [#tpu.dimension_semantics<parallel>], iteration_bounds = array<i64: 1>, scalar_prefetch = 0 : i64, scratch_operands = 0 : i64, tpu.core_type = #tpu.core_type<tc>, window_params = [{transform_indices = @transform_0, window_bounds = array<i64: 16, 16>}, {pipeline_mode = #tpu.pipeline_mode<synchronous>, transform_indices = @transform_1, window_bounds = array<i64: 16, 128>}, {pipeline_mode = #tpu.pipeline_mode<synchronous>, transform_indices = @transform_2, window_bounds = array<i64: 1, 128>}, {pipeline_mode = #tpu.pipeline_mode<synchronous>, transform_indices = @transform_3, window_bounds = array<i64: 128, 128>}, {pipeline_mode = #tpu.pipeline_mode<synchronous>, transform_indices = @transform_4, window_bounds = array<i64: 1, 128>}, {transform_indices = @transform_5, window_bounds = array<i64: 16, 128>}]} {
    %c0 = arith.constant 0 : index
    %c0_0 = arith.constant 0 : index
    %0 = vector.load %arg1[%c0, %c0_0] : memref<16x16xf32, #tpu.memory_space<vmem>>, vector<16x16xf32>
    %c0_1 = arith.constant 0 : index
    %c0_2 = arith.constant 0 : index
    %1 = vector.load %arg2[%c0_1, %c0_2] : memref<16x128xf32, #tpu.memory_space<vmem>>, vector<16x128xf32>
    %cst = arith.constant dense<0.000000e+00> : vector<16x128xf32>
    %2 = tpu.matmul %0, %1, %cst {dimension_numbers = #tpu.dot_dimension_numbers<[1], [0], [0], [1], [0, 0, 1, 1], [], []>} : vector<16x16xf32>, vector<16x128xf32>, vector<16x128xf32> -> vector<16x128xf32>
    %c0_3 = arith.constant 0 : index
    %c0_4 = arith.constant 0 : index
    %3 = vector.load %arg3[%c0_3, %c0_4] : memref<1x128xf32, #tpu.memory_space<vmem>>, vector<1x128xf32>
    %4 = vector.broadcast %3 : vector<1x128xf32> to vector<16x128xf32>
    %5 = arith.addf %2, %4 : vector<16x128xf32>
    %cst_5 = arith.constant 0.000000e+00 : f32
    %6 = vector.broadcast %cst_5 : f32 to vector<16x128xf32>
    %7 = arith.cmpf ogt, %5, %6 : vector<16x128xf32>
    %cst_6 = arith.constant 1.000000e-01 : f32
    %8 = vector.broadcast %cst_6 : f32 to vector<16x128xf32>
    %9 = arith.mulf %8, %5 : vector<16x128xf32>
    %10 = arith.select %7, %5, %9 : vector<16x128xi1>, vector<16x128xf32>
    %c0_7 = arith.constant 0 : index
    %c0_8 = arith.constant 0 : index
    %11 = vector.load %arg4[%c0_7, %c0_8] : memref<128x128xf32, #tpu.memory_space<vmem>>, vector<128x128xf32>
    %cst_9 = arith.constant dense<0.000000e+00> : vector<16x128xf32>
    %12 = tpu.matmul %10, %11, %cst_9 {dimension_numbers = #tpu.dot_dimension_numbers<[1], [0], [0], [1], [0, 0, 1, 1], [], []>} : vector<16x128xf32>, vector<128x128xf32>, vector<16x128xf32> -> vector<16x128xf32>
    %c0_10 = arith.constant 0 : index
    %c0_11 = arith.constant 0 : index
    %13 = vector.load %arg5[%c0_10, %c0_11] : memref<1x128xf32, #tpu.memory_space<vmem>>, vector<1x128xf32>
    %14 = vector.broadcast %13 : vector<1x128xf32> to vector<16x128xf32>
    %15 = arith.addf %12, %14 : vector<16x128xf32>
    %cst_12 = arith.constant 0.000000e+00 : f32
    %16 = vector.broadcast %cst_12 : f32 to vector<16x128xf32>
    %17 = arith.cmpf ogt, %15, %16 : vector<16x128xf32>
    %cst_13 = arith.constant 1.000000e-01 : f32
    %18 = vector.broadcast %cst_13 : f32 to vector<16x128xf32>
    %19 = arith.mulf %18, %15 : vector<16x128xf32>
    %20 = arith.select %17, %15, %19 : vector<16x128xi1>, vector<16x128xf32>
    %c0_14 = arith.constant 0 : index
    %c0_15 = arith.constant 0 : index
    %21 = vector.load %arg6[%c0_14, %c0_15] : memref<16x128xf32, #tpu.memory_space<vmem>>, vector<16x128xf32>
    tpu.vector_store %arg6[%c0_14, %c0_15], %20 {strides = array<i32>} : memref<16x128xf32, #tpu.memory_space<vmem>>, vector<16x128xf32>,
    return
  }
  func.func @transform_0(%arg0: i32) -> (i32, i32) {
    %c0_i32 = arith.constant 0 : i32
    %c0_i32_0 = arith.constant 0 : i32
    return %arg0, %c0_i32 : i32, i32
  }
  func.func @transform_1(%arg0: i32) -> (i32, i32) {
    %c0_i32 = arith.constant 0 : i32
    %c0_i32_0 = arith.constant 0 : i32
    %c0_i32_1 = arith.constant 0 : i32
    return %c0_i32, %c0_i32_0 : i32, i32
  }
  func.func @transform_2(%arg0: i32) -> (i32, i32) {
    %c0_i32 = arith.constant 0 : i32
    %c0_i32_0 = arith.constant 0 : i32
    %c0_i32_1 = arith.constant 0 : i32
    return %c0_i32, %c0_i32_0 : i32, i32
  }
  func.func @transform_3(%arg0: i32) -> (i32, i32) {
    %c0_i32 = arith.constant 0 : i32
    %c0_i32_0 = arith.constant 0 : i32
    %c0_i32_1 = arith.constant 0 : i32
    return %c0_i32, %c0_i32_0 : i32, i32
  }
  func.func @transform_4(%arg0: i32) -> (i32, i32) {
    %c0_i32 = arith.constant 0 : i32
    %c0_i32_0 = arith.constant 0 : i32
    %c0_i32_1 = arith.constant 0 : i32
    return %c0_i32, %c0_i32_0 : i32, i32
  }
  func.func @transform_5(%arg0: i32) -> (i32, i32) {
    %c0_i32 = arith.constant 0 : i32
    %c0_i32_0 = arith.constant 0 : i32
    return %arg0, %c0_i32 : i32, i32
  }
}

module attributes {stable_mosaic.version = 11 : i64} {
  func.func @_mlp_kernel(%arg0: i32, %arg1: memref<16x16xf32, #tpu.memory_space<vmem>>, %arg2: memref<16x128xf32, #tpu.memory_space<vmem>>, %arg3: memref<1x128xf32, #tpu.memory_space<vmem>>, %arg4: memref<128x128xf32, #tpu.memory_space<vmem>>, %arg5: memref<1x128xf32, #tpu.memory_space<vmem>>, %arg6: memref<16x128xf32, #tpu.memory_space<vmem>>) attributes {dimension_semantics = [#tpu.dimension_semantics<parallel>], iteration_bounds = array<i64: 1>, scalar_prefetch = 0 : i64, scratch_operands = 0 : i64, tpu.core_type = #tpu.core_type<tc>, window_params = [{transform_indices = @transform_0, window_bounds = array<i64: 16, 16>}, {pipeline_mode = #tpu.pipeline_mode<synchronous>, transform_indices = @transform_1, window_bounds = array<i64: 16, 128>}, {pipeline_mode = #tpu.pipeline_mode<synchronous>, transform_indices = @transform_2, window_bounds = array<i64: 1, 128>}, {pipeline_mode = #tpu.pipeline_mode<synchronous>, transform_indices = @transform_3, window_bounds = array<i64: 128, 128>}, {pipeline_mode = #tpu.pipeline_mode<synchronous>, transform_indices = @transform_4, window_bounds = array<i64: 1, 128>}, {transform_indices = @transform_5, window_bounds = array<i64: 16, 128>}]} {
    %c0 = arith.constant 0 : index
    %c0_0 = arith.constant 0 : index
    %0 = vector.load %arg1[%c0, %c0_0] : memref<16x16xf32, #tpu.memory_space<vmem>>, vector<16x16xf32>
    %c0_1 = arith.constant 0 : index
    %c0_2 = arith.constant 0 : index
    %1 = vector.load %arg2[%c0_1, %c0_2] : memref<16x128xf32, #tpu.memory_space<vmem>>, vector<16x128xf32>
    %cst = arith.constant dense<0.000000e+00> : vector<16x128xf32>
    %2 = tpu.matmul %0, %1, %cst {dimension_numbers = #tpu.dot_dimension_numbers<[1], [0], [0], [1], [0, 0, 1, 1], [], []>} : vector<16x16xf32>, vector<16x128xf32>, vector<16x128xf32> -> vector<16x128xf32>
    %c0_3 = arith.constant 0 : index
    %c0_4 = arith.constant 0 : index
    %3 = vector.load %arg3[%c0_3, %c0_4] : memref<1x128xf32, #tpu.memory_space<vmem>>, vector<1x128xf32>
    %4 = vector.broadcast %3 : vector<1x128xf32> to vector<16x128xf32>
    %5 = arith.addf %2, %4 : vector<16x128xf32>
    %cst_5 = arith.constant 0.000000e+00 : f32
    %6 = vector.broadcast %cst_5 : f32 to vector<16x128xf32>
    %7 = arith.cmpf ogt, %5, %6 : vector<16x128xf32>
    %cst_6 = arith.constant 1.000000e-01 : f32
    %8 = vector.broadcast %cst_6 : f32 to vector<16x128xf32>
    %9 = arith.mulf %8, %5 : vector<16x128xf32>
    %10 = arith.select %7, %5, %9 : vector<16x128xi1>, vector<16x128xf32>
    %c0_7 = arith.constant 0 : index
    %c0_8 = arith.constant 0 : index
    %11 = vector.load %arg4[%c0_7, %c0_8] : memref<128x128xf32, #tpu.memory_space<vmem>>, vector<128x128xf32>
    %cst_9 = arith.constant dense<0.000000e+00> : vector<16x128xf32>
    %12 = tpu.matmul %10, %11, %cst_9 {dimension_numbers = #tpu.dot_dimension_numbers<[1], [0], [0], [1], [0, 0, 1, 1], [], []>} : vector<16x128xf32>, vector<128x128xf32>, vector<16x128xf32> -> vector<16x128xf32>
    %c0_10 = arith.constant 0 : index
    %c0_11 = arith.constant 0 : index
    %13 = vector.load %arg5[%c0_10, %c0_11] : memref<1x128xf32, #tpu.memory_space<vmem>>, vector<1x128xf32>
    %14 = vector.broadcast %13 : vector<1x128xf32> to vector<16x128xf32>
    %15 = arith.addf %12, %14 : vector<16x128xf32>
    %cst_12 = arith.constant 0.000000e+00 : f32
    %16 = vector.broadcast %cst_12 : f32 to vector<16x128xf32>
    %17 = arith.cmpf ogt, %15, %16 : vector<16x128xf32>
    %cst_13 = arith.constant 1.000000e-01 : f32
    %18 = vector.broadcast %cst_13 : f32 to vector<16x128xf32>
    %19 = arith.mulf %18, %15 : vector<16x128xf32>
    %20 = arith.select %17, %15, %19 : vector<16x128xi1>, vector<16x128xf32>
    %c0_14 = arith.constant 0 : index
    %c0_15 = arith.constant 0 : index
    %21 = vector.load %arg6[%c0_14, %c0_15] : memref<16x128xf32, #tpu.memory_space<vmem>>, vector<16x128xf32>
    tpu.vector_store %arg6[%c0_14, %c0_15], %20 {strides = array<i32>} : memref<16x128xf32, #tpu.memory_space<vmem>>, vector<16x128xf32>,
    return
  }
  func.func @transform_0(%arg0: i32) -> (i32, i32) {
    %c0_i32 = arith.constant 0 : i32
    %c0_i32_0 = arith.constant 0 : i32
    return %arg0, %c0_i32 : i32, i32
  }
  func.func @transform_1(%arg0: i32) -> (i32, i32) {
    %c0_i32 = arith.constant 0 : i32
    %c0_i32_0 = arith.constant 0 : i32
    %c0_i32_1 = arith.constant 0 : i32
    return %c0_i32, %c0_i32_0 : i32, i32
  }
  func.func @transform_2(%arg0: i32) -> (i32, i32) {
    %c0_i32 = arith.constant 0 : i32
    %c0_i32_0 = arith.constant 0 : i32
    %c0_i32_1 = arith.constant 0 : i32
    return %c0_i32, %c0_i32_0 : i32, i32
  }
  func.func @transform_3(%arg0: i32) -> (i32, i32) {
    %c0_i32 = arith.constant 0 : i32
    %c0_i32_0 = arith.constant 0 : i32
    %c0_i32_1 = arith.constant 0 : i32
    return %c0_i32, %c0_i32_0 : i32, i32
  }
  func.func @transform_4(%arg0: i32) -> (i32, i32) {
    %c0_i32 = arith.constant 0 : i32
    %c0_i32_0 = arith.constant 0 : i32
    %c0_i32_1 = arith.constant 0 : i32
    return %c0_i32, %c0_i32_0 : i32, i32
  }
  func.func @transform_5(%arg0: i32) -> (i32, i32) {
    %c0_i32 = arith.constant 0 : i32
    %c0_i32_0 = arith.constant 0 : i32
    return %arg0, %c0_i32 : i32, i32
  }
}

</mosaic_0001>

<bundles_post_ra>
// kernel: _forward.1
= control target key start
LH: loop header
LB: loop body
LE: loop exit
PB: predicated region body
PF: predicated region fallthrough
CT: control target
= control target key end

     0   :  { %10 = vsyncpa [#allocation3], 0  ;;  %s552_s0 = inlined_call_operand.hbm [shape: f32[16,16], index: 0, kind: input, shape index: {}]   ;;  %s553_s1 = inlined_call_operand.hbm [shape: f32[16,128], index: 1, kind: input, shape index: {}]   ;;  %s554_s2 = inlined_call_operand.vmem [shape: f32[1,128], index: 2, kind: input, shape index: {}]   ;;  %s555_s3 = inlined_call_operand.hbm [shape: f32[128,128], index: 3, kind: input, shape index: {}]   ;;  %s556_s4 = inlined_call_operand.vmem [shape: f32[1,128], index: 4, kind: input, shape index: {}]   ;;  %s557_s5 = inlined_call_operand.vmem [shape: f32[16,128], index: 5, kind: output, shape index: {}]  }
   0x1   :  { %11 = vsyncpa [#allocation5], 0  ;;  %s451_s18 = smov [#allocation4]   ;;  %s452_s20 = smov [#allocation2]  }
   0x2   :  { %s29_s19 = sshll.u32 %s451_s18, 4  ;;  %s17_s21 = sshll.u32 %s452_s20, 4  ;;  %s30_s19 = int_to_ptr.vmem [resolvable:$true] %s29_s19  ;;  %s486_s21 = int_to_ptr.vmem [resolvable:$true] %s17_s21 }
   0x3   :  { %s381_s24 = scalar_lea.hbm %s553_s1, 256 }
   0x4   :  { %p382_p0 = scmp.ne.s32.totalorder %s553_s1, %s381_s24  ;;  %p385_p1 = scmp.lt.u32.totalorder %s381_s24, %s553_s1 }
   0x6   :  { %p387_p2 = pnand %p385_p1, %p382_p0 }
   0x8   :  { %390 = shalt.err (!%p387_p2)
}
   0x9   :  { %s391_s29 = scalar_lea.vmem %s30_s19, 256  ;;  %p396_p4 = scmp.lt.s32.totalorder %s30_s19, %s30_s19 }
   0xa   :  { %p392_p3 = scmp.ne.s32.totalorder %s30_s19, %s391_s29  ;;  %p397_p5 = scmp.lt.s32.totalorder %s391_s29, %s391_s29 }
   0xc   :  { %p398_p6 = por %p397_p5, %p396_p4 }
   0xe   :  { %p399_p7 = pnand %p398_p6, %p392_p3 }
  0x10   :  { %402 = shalt.err (!%p399_p7)
}
  0x11   :  { %s453_s30 = smov 128   ;;  %s454_s6 = smov 8  }
  0x12   :  { %35 = dma.hbm_to_vmem [thread:$0]  %s553_s1, 256, %s30_s19, [#allocation5], %s453_s30, %s453_s30, %s454_s6  }
  0x13   :  { %s403_s11 = scalar_lea.hbm %s552_s0, 256 }
  0x14   :  { %p404_p8 = scmp.ne.s32.totalorder %s552_s0, %s403_s11  ;;  %p407_p9 = scmp.lt.u32.totalorder %s403_s11, %s552_s0 }
  0x16   :  { %p409_p10 = pnand %p407_p9, %p404_p8 }
  0x18   :  { %412 = shalt.err (!%p409_p10)
}
  0x19   :  { %s413_s16 = scalar_lea.vmem %s486_s21, 256  ;;  %p418_p12 = scmp.lt.s32.totalorder %s486_s21, %s486_s21 }
  0x1a   :  { %p414_p11 = scmp.ne.s32.totalorder %s486_s21, %s413_s16  ;;  %p419_p13 = scmp.lt.s32.totalorder %s413_s16, %s413_s16 }
  0x1c   :  { %p420_p0 = por %p419_p13, %p418_p12 }
  0x1e   :  { %p421_p1 = pnand %p420_p0, %p414_p11 }
  0x20   :  { %424 = shalt.err (!%p421_p1)
}
  0x21   :  { %23 = dma.hbm_to_vmem [thread:$0]  %s552_s0, 256, %s486_s21, [#allocation3], %s453_s30, %s453_s30, %s454_s6  }
  0x22   :  { %s455_s18 = smov [#allocation6]   ;;  %s425_s23 = scalar_lea.hbm %s555_s3, 2048 }
  0x23   :  { %s43_s19 = sshll.u32 %s455_s18, 4  ;;  %p426_p2 = scmp.ne.s32.totalorder %s555_s3, %s425_s23  ;;  %s44_s19 = int_to_ptr.vmem [resolvable:$true] %s43_s19 }
  0x24   :  { %p429_p3 = scmp.lt.u32.totalorder %s425_s23, %s555_s3 }
  0x26   :  { %p431_p4 = pnand %p429_p3, %p426_p2 }
  0x28   :  { %434 = shalt.err (!%p431_p4)
}
  0x29   :  { %s435_s28 = scalar_lea.vmem %s44_s19, 2048  ;;  %p440_p6 = scmp.lt.s32.totalorder %s44_s19, %s44_s19 }
  0x2a   :  { %p436_p5 = scmp.ne.s32.totalorder %s44_s19, %s435_s28  ;;  %p441_p7 = scmp.lt.s32.totalorder %s435_s28, %s435_s28 }
  0x2c   :  { %p442_p8 = por %p441_p7, %p440_p6 }
  0x2e   :  { %p443_p9 = pnand %p442_p8, %p436_p5 }
  0x30   :  { %446 = shalt.err (!%p443_p9)
}
  0x31   :  { %49 = dma.hbm_to_vmem [thread:$0]  %s555_s3, 2048, %s44_s19, [#allocation5], %s453_s30, %s453_s30, %s454_s6  }
  0x32   :  { %447 = dma.done.wait [#allocation3], 256  }
  0x33   :  { %448 = vsyncadd [#allocation3], 4294967040 }
  0x34   :  { %449 = dma.done.wait [#allocation5], 2304  }
  0x35   :  { %450 = vsyncadd [#allocation5], 4294964992  ;;  %vm72_vm0 = vcmask 130048   ;;  %v63_v0 = vld [vmem:[#allocation4] sm:$0xff]  ;;  %v64_v1 = vld [vmem:[#allocation4 + $0x8] sm:$0xff] }
  0x36   :  { %v61_v2 = vld [vmem:[#allocation2] sm:$0xff]  ;;  %v340_v3 = vpack.c.bf16 %v64_v1, %v63_v0  ;;  %v161_v5 = vld [vmem:[#allocation6 + $0x8] sm:$0xff]  ;;  %v162_v7 = vld [vmem:[#allocation6 + $0x10] sm:$0xff] }
  0x37   :  { %302 = vmatprep.mubr.msk.f32.mxu0 %vm72_vm0, %v61_v2  ;;  %v160_v4 = vld [vmem:[#allocation6] sm:$0xff]  ;;  %v163_v8 = vld [vmem:[#allocation6 + $0x18] sm:$0xff]  ;;  %v165_v11 = vld [vmem:[#allocation6 + $0x28] sm:$0xff] }
  0x38   :  { %v344_v6 = vpack.c.bf16 %v161_v5, %v160_v4  ;;  %341 = vmatprep.subr.bf16.mxu0 %v340_v3  ;;  %v348_v9 = vpack.c.bf16 %v163_v8, %v162_v7  ;;  %v164_v10 = vld [vmem:[#allocation6 + $0x20] sm:$0xff]  ;;  %v62_v12 = vld [vmem:[#allocation2 + $0x8] sm:$0xff]  ;;  %v166_v14 = vld [vmem:[#allocation6 + $0x30] sm:$0xff] }
  0x39   :  { %343 = vmatpush3.bf16.msra.mxu0 %v340_v3  ;;  %v352_v13 = vpack.c.bf16 %v165_v11, %v164_v10  ;;  %v167_v15 = vld [vmem:[#allocation6 + $0x38] sm:$0xff]  ;;  %v168_v17 = vld [vmem:[#allocation6 + $0x40] sm:$0xff]  ;;  %v169_v18 = vld [vmem:[#allocation6 + $0x48] sm:$0xff] }
  0x3a   :  { %345 = vmatprep.subr.bf16.mxu1 %v344_v6  ;;  %v356_v16 = vpack.c.bf16 %v167_v15, %v166_v14  ;;  %v360_v19 = vpack.c.bf16 %v169_v18, %v168_v17  ;;  %v170_v20 = vld [vmem:[#allocation6 + $0x50] sm:$0xff]  ;;  %v171_v21 = vld [vmem:[#allocation6 + $0x58] sm:$0xff]  ;;  %v172_v23 = vld [vmem:[#allocation6 + $0x60] sm:$0xff] }
  0x3b   :  { %347 = vmatpush3.bf16.msra.mxu1 %v344_v6  ;;  %v364_v22 = vpack.c.bf16 %v171_v21, %v170_v20  ;;  %v173_v24 = vld [vmem:[#allocation6 + $0x68] sm:$0xff]  ;;  %v174_v26 = vld [vmem:[#allocation6 + $0x70] sm:$0xff]  ;;  %v175_v27 = vld [vmem:[#allocation6 + $0x78] sm:$0xff] }
  0x3c   :  { %349 = vmatprep.subr.bf16.mxu1 %v348_v9  ;;  %303 = vmatmul.mubr.msk.f32.vlgmr.msra.gmra.mrb[0].mxu0 %vm72_vm0, %v62_v12  ;;  %v368_v25 = vpack.c.bf16 %v173_v24, %v172_v23  ;;  %v372_v28 = vpack.c.bf16 %v175_v27, %v174_v26  ;;  %v272_v29 = vld [vmem:[%s554_s2] ss:$0 sm:$0xff] }
  0x3d   :  { %v275_v38 = vld [vmem:[%s556_s4] ss:$0 sm:$0xff] }
  0x3f   :  { %351 = vmatpush3.bf16.msra.mxu1 %v348_v9 }
  0x40   :  { %353 = vmatprep.subr.bf16.mxu1 %v352_v13 }
  0x43   :  { %355 = vmatpush3.bf16.msra.mxu1 %v352_v13 }
  0x44   :  { %357 = vmatprep.subr.bf16.mxu1 %v356_v16 }
  0x47   :  { %359 = vmatpush3.bf16.msra.mxu1 %v356_v16 }
  0x48   :  { %361 = vmatprep.subr.bf16.mxu1 %v360_v19 }
  0x4b   :  { %363 = vmatpush3.bf16.msra.mxu1 %v360_v19 }
  0x4c   :  { %365 = vmatprep.subr.bf16.mxu1 %v364_v22 }
  0x4f   :  { %367 = vmatpush3.bf16.msra.mxu1 %v364_v22 }
  0x50   :  { %369 = vmatprep.subr.bf16.mxu1 %v368_v25 }
  0x53   :  { %371 = vmatpush3.bf16.msra.mxu1 %v368_v25 }
  0x54   :  { %373 = vmatprep.subr.bf16.mxu1 %v372_v28 }
  0x57   :  { %375 = vmatpush3.bf16.msra.mxu1 %v372_v28 }
 0x10f   :  { %v304_v30 = vpop.f32.mrb[0].mxu0 }
 0x110   :  { %v151_v31 = vadd.f32 %v304_v30, %v272_v29  ;;  %v145_v32 = vpop.f32.mrb[1].mxu0 }
 0x111   :  { %v146_v33 = vadd.f32 %v272_v29, %v145_v32 }
 0x112   :  { %v157_v34 = vmul.f32 0.1, %v151_v31  ;;  %vm155_vm2 = vcmp.gt.f32.partialorder %v151_v31, 0.0 }
 0x113   :  { %vm154_vm1 = vcmp.gt.f32.partialorder %v146_v33, 0.0  ;;  %v156_v35 = vmul.f32 0.1, %v146_v33 }
 0x114   :  { %v159_v37 = vsel %vm155_vm2, %v151_v31, %v157_v34 }
 0x115   :  { %v158_v36 = vsel %vm154_vm1, %v146_v33, %v156_v35 }
 0x116   :  { %337 = vmatprep.mubr.f32.mxu1 %v158_v36 }
 0x117   :  { %338 = vmatmul.mubr.f32.vlgmr.msra.gmra.mrb[0].mxu1 %v159_v37 }
 0x1ea   :  { %v339_v39 = vpop.f32.mrb[0].mxu1 }
 0x1eb   :  { %v255_v40 = vadd.f32 %v339_v39, %v275_v38  ;;  %v249_v41 = vpop.f32.mrb[1].mxu1 }
 0x1ec   :  { %v250_v42 = vadd.f32 %v275_v38, %v249_v41 }
 0x1ed   :  { %vm259_vm3 = vcmp.gt.f32.partialorder %v255_v40, 0.0  ;;  %v261_v43 = vmul.f32 0.1, %v255_v40 }
 0x1ee   :  { %vm258_vm4 = vcmp.gt.f32.partialorder %v250_v42, 0.0  ;;  %v260_v44 = vmul.f32 0.1, %v250_v42 }
 0x1ef   :  { %v263_v45 = vsel %vm259_vm3, %v255_v40, %v261_v43 }
 0x1f0   :  { %265 = vst [vmem:[%s557_s5 + $0x8] sm:$0xff] %v263_v45  ;;  %v262_v46 = vsel %vm258_vm4, %v250_v42, %v260_v44 }
 0x1f1   :  { %264 = vst [vmem:[%s557_s5] sm:$0xff] %v262_v46 }
 0x1f2   :  { %270 = vsyncpa [#allocation3], 1 }
 0x1f3   :  { %271 = vsyncpa [#allocation5], 1 }

// kernel: _forward.1
= control target key start
LH: loop header
LB: loop body
LE: loop exit
PB: predicated region body
PF: predicated region fallthrough
CT: control target
= control target key end

     0   :  { %10 = vsyncpa [#allocation3], 0  ;;  %s552_s0 = inlined_call_operand.hbm [shape: f32[16,16], index: 0, kind: input, shape index: {}]   ;;  %s553_s1 = inlined_call_operand.hbm [shape: f32[16,128], index: 1, kind: input, shape index: {}]   ;;  %s554_s2 = inlined_call_operand.vmem [shape: f32[1,128], index: 2, kind: input, shape index: {}]   ;;  %s555_s3 = inlined_call_operand.hbm [shape: f32[128,128], index: 3, kind: input, shape index: {}]   ;;  %s556_s4 = inlined_call_operand.vmem [shape: f32[1,128], index: 4, kind: input, shape index: {}]   ;;  %s557_s5 = inlined_call_operand.vmem [shape: f32[16,128], index: 5, kind: output, shape index: {}]  }
   0x1   :  { %11 = vsyncpa [#allocation5], 0  ;;  %s451_s18 = smov [#allocation4]   ;;  %s452_s20 = smov [#allocation2]  }
   0x2   :  { %s29_s19 = sshll.u32 %s451_s18, 4  ;;  %s17_s21 = sshll.u32 %s452_s20, 4  ;;  %s30_s19 = int_to_ptr.vmem [resolvable:$true] %s29_s19  ;;  %s486_s21 = int_to_ptr.vmem [resolvable:$true] %s17_s21 }
   0x3   :  { %s381_s24 = scalar_lea.hbm %s553_s1, 256 }
   0x4   :  { %p382_p0 = scmp.ne.s32.totalorder %s553_s1, %s381_s24  ;;  %p385_p1 = scmp.lt.u32.totalorder %s381_s24, %s553_s1 }
   0x6   :  { %p387_p2 = pnand %p385_p1, %p382_p0 }
   0x8   :  { %390 = shalt.err (!%p387_p2)
}
   0x9   :  { %s391_s29 = scalar_lea.vmem %s30_s19, 256  ;;  %p396_p4 = scmp.lt.s32.totalorder %s30_s19, %s30_s19 }
   0xa   :  { %p392_p3 = scmp.ne.s32.totalorder %s30_s19, %s391_s29  ;;  %p397_p5 = scmp.lt.s32.totalorder %s391_s29, %s391_s29 }
   0xc   :  { %p398_p6 = por %p397_p5, %p396_p4 }
   0xe   :  { %p399_p7 = pnand %p398_p6, %p392_p3 }
  0x10   :  { %402 = shalt.err (!%p399_p7)
}
  0x11   :  { %s453_s30 = smov 128   ;;  %s454_s6 = smov 8  }
  0x12   :  { %35 = dma.hbm_to_vmem [thread:$0]  %s553_s1, 256, %s30_s19, [#allocation5], %s453_s30, %s453_s30, %s454_s6  }
  0x13   :  { %s403_s11 = scalar_lea.hbm %s552_s0, 256 }
  0x14   :  { %p404_p8 = scmp.ne.s32.totalorder %s552_s0, %s403_s11  ;;  %p407_p9 = scmp.lt.u32.totalorder %s403_s11, %s552_s0 }
  0x16   :  { %p409_p10 = pnand %p407_p9, %p404_p8 }
  0x18   :  { %412 = shalt.err (!%p409_p10)
}
  0x19   :  { %s413_s16 = scalar_lea.vmem %s486_s21, 256  ;;  %p418_p12 = scmp.lt.s32.totalorder %s486_s21, %s486_s21 }
  0x1a   :  { %p414_p11 = scmp.ne.s32.totalorder %s486_s21, %s413_s16  ;;  %p419_p13 = scmp.lt.s32.totalorder %s413_s16, %s413_s16 }
  0x1c   :  { %p420_p0 = por %p419_p13, %p418_p12 }
  0x1e   :  { %p421_p1 = pnand %p420_p0, %p414_p11 }
  0x20   :  { %424 = shalt.err (!%p421_p1)
}
  0x21   :  { %23 = dma.hbm_to_vmem [thread:$0]  %s552_s0, 256, %s486_s21, [#allocation3], %s453_s30, %s453_s30, %s454_s6  }
  0x22   :  { %s455_s18 = smov [#allocation6]   ;;  %s425_s23 = scalar_lea.hbm %s555_s3, 2048 }
  0x23   :  { %s43_s19 = sshll.u32 %s455_s18, 4  ;;  %p426_p2 = scmp.ne.s32.totalorder %s555_s3, %s425_s23  ;;  %s44_s19 = int_to_ptr.vmem [resolvable:$true] %s43_s19 }
  0x24   :  { %p429_p3 = scmp.lt.u32.totalorder %s425_s23, %s555_s3 }
  0x26   :  { %p431_p4 = pnand %p429_p3, %p426_p2 }
  0x28   :  { %434 = shalt.err (!%p431_p4)
}
  0x29   :  { %s435_s28 = scalar_lea.vmem %s44_s19, 2048  ;;  %p440_p6 = scmp.lt.s32.totalorder %s44_s19, %s44_s19 }
  0x2a   :  { %p436_p5 = scmp.ne.s32.totalorder %s44_s19, %s435_s28  ;;  %p441_p7 = scmp.lt.s32.totalorder %s435_s28, %s435_s28 }
  0x2c   :  { %p442_p8 = por %p441_p7, %p440_p6 }
  0x2e   :  { %p443_p9 = pnand %p442_p8, %p436_p5 }
  0x30   :  { %446 = shalt.err (!%p443_p9)
}
  0x31   :  { %49 = dma.hbm_to_vmem [thread:$0]  %s555_s3, 2048, %s44_s19, [#allocation5], %s453_s30, %s453_s30, %s454_s6  }
  0x32   :  { %447 = dma.done.wait [#allocation3], 256  }
  0x33   :  { %448 = vsyncadd [#allocation3], 4294967040 }
  0x34   :  { %449 = dma.done.wait [#allocation5], 2304  }
  0x35   :  { %450 = vsyncadd [#allocation5], 4294964992  ;;  %vm72_vm0 = vcmask 130048   ;;  %v63_v0 = vld [vmem:[#allocation4] sm:$0xff]  ;;  %v64_v1 = vld [vmem:[#allocation4 + $0x8] sm:$0xff] }
  0x36   :  { %v61_v2 = vld [vmem:[#allocation2] sm:$0xff]  ;;  %v340_v3 = vpack.c.bf16 %v64_v1, %v63_v0  ;;  %v161_v5 = vld [vmem:[#allocation6 + $0x8] sm:$0xff]  ;;  %v162_v7 = vld [vmem:[#allocation6 + $0x10] sm:$0xff] }
  0x37   :  { %302 = vmatprep.mubr.msk.f32.mxu0 %vm72_vm0, %v61_v2  ;;  %v160_v4 = vld [vmem:[#allocation6] sm:$0xff]  ;;  %v163_v8 = vld [vmem:[#allocation6 + $0x18] sm:$0xff]  ;;  %v165_v11 = vld [vmem:[#allocation6 + $0x28] sm:$0xff] }
  0x38   :  { %v344_v6 = vpack.c.bf16 %v161_v5, %v160_v4  ;;  %341 = vmatprep.subr.bf16.mxu0 %v340_v3  ;;  %v348_v9 = vpack.c.bf16 %v163_v8, %v162_v7  ;;  %v164_v10 = vld [vmem:[#allocation6 + $0x20] sm:$0xff]  ;;  %v62_v12 = vld [vmem:[#allocation2 + $0x8] sm:$0xff]  ;;  %v166_v14 = vld [vmem:[#allocation6 + $0x30] sm:$0xff] }
  0x39   :  { %343 = vmatpush3.bf16.msra.mxu0 %v340_v3  ;;  %v352_v13 = vpack.c.bf16 %v165_v11, %v164_v10  ;;  %v167_v15 = vld [vmem:[#allocation6 + $0x38] sm:$0xff]  ;;  %v168_v17 = vld [vmem:[#allocation6 + $0x40] sm:$0xff]  ;;  %v169_v18 = vld [vmem:[#allocation6 + $0x48] sm:$0xff] }
  0x3a   :  { %345 = vmatprep.subr.bf16.mxu1 %v344_v6  ;;  %v356_v16 = vpack.c.bf16 %v167_v15, %v166_v14  ;;  %v360_v19 = vpack.c.bf16 %v169_v18, %v168_v17  ;;  %v170_v20 = vld [vmem:[#allocation6 + $0x50] sm:$0xff]  ;;  %v171_v21 = vld [vmem:[#allocation6 + $0x58] sm:$0xff]  ;;  %v172_v23 = vld [vmem:[#allocation6 + $0x60] sm:$0xff] }
  0x3b   :  { %347 = vmatpush3.bf16.msra.mxu1 %v344_v6  ;;  %v364_v22 = vpack.c.bf16 %v171_v21, %v170_v20  ;;  %v173_v24 = vld [vmem:[#allocation6 + $0x68] sm:$0xff]  ;;  %v174_v26 = vld [vmem:[#allocation6 + $0x70] sm:$0xff]  ;;  %v175_v27 = vld [vmem:[#allocation6 + $0x78] sm:$0xff] }
  0x3c   :  { %349 = vmatprep.subr.bf16.mxu1 %v348_v9  ;;  %303 = vmatmul.mubr.msk.f32.vlgmr.msra.gmra.mrb[0].mxu0 %vm72_vm0, %v62_v12  ;;  %v368_v25 = vpack.c.bf16 %v173_v24, %v172_v23  ;;  %v372_v28 = vpack.c.bf16 %v175_v27, %v174_v26  ;;  %v272_v29 = vld [vmem:[%s554_s2] ss:$0 sm:$0xff] }
  0x3d   :  { %v275_v38 = vld [vmem:[%s556_s4] ss:$0 sm:$0xff] }
  0x3f   :  { %351 = vmatpush3.bf16.msra.mxu1 %v348_v9 }
  0x40   :  { %353 = vmatprep.subr.bf16.mxu1 %v352_v13 }
  0x43   :  { %355 = vmatpush3.bf16.msra.mxu1 %v352_v13 }
  0x44   :  { %357 = vmatprep.subr.bf16.mxu1 %v356_v16 }
  0x47   :  { %359 = vmatpush3.bf16.msra.mxu1 %v356_v16 }
  0x48   :  { %361 = vmatprep.subr.bf16.mxu1 %v360_v19 }
  0x4b   :  { %363 = vmatpush3.bf16.msra.mxu1 %v360_v19 }
  0x4c   :  { %365 = vmatprep.subr.bf16.mxu1 %v364_v22 }
  0x4f   :  { %367 = vmatpush3.bf16.msra.mxu1 %v364_v22 }
  0x50   :  { %369 = vmatprep.subr.bf16.mxu1 %v368_v25 }
  0x53   :  { %371 = vmatpush3.bf16.msra.mxu1 %v368_v25 }
  0x54   :  { %373 = vmatprep.subr.bf16.mxu1 %v372_v28 }
  0x57   :  { %375 = vmatpush3.bf16.msra.mxu1 %v372_v28 }
 0x10f   :  { %v304_v30 = vpop.f32.mrb[0].mxu0 }
 0x110   :  { %v151_v31 = vadd.f32 %v304_v30, %v272_v29  ;;  %v145_v32 = vpop.f32.mrb[1].mxu0 }
 0x111   :  { %v146_v33 = vadd.f32 %v272_v29, %v145_v32 }
 0x112   :  { %v157_v34 = vmul.f32 0.1, %v151_v31  ;;  %vm155_vm2 = vcmp.gt.f32.partialorder %v151_v31, 0.0 }
 0x113   :  { %vm154_vm1 = vcmp.gt.f32.partialorder %v146_v33, 0.0  ;;  %v156_v35 = vmul.f32 0.1, %v146_v33 }
 0x114   :  { %v159_v37 = vsel %vm155_vm2, %v151_v31, %v157_v34 }
 0x115   :  { %v158_v36 = vsel %vm154_vm1, %v146_v33, %v156_v35 }
 0x116   :  { %337 = vmatprep.mubr.f32.mxu1 %v158_v36 }
 0x117   :  { %338 = vmatmul.mubr.f32.vlgmr.msra.gmra.mrb[0].mxu1 %v159_v37 }
 0x1ea   :  { %v339_v39 = vpop.f32.mrb[0].mxu1 }
 0x1eb   :  { %v255_v40 = vadd.f32 %v339_v39, %v275_v38  ;;  %v249_v41 = vpop.f32.mrb[1].mxu1 }
 0x1ec   :  { %v250_v42 = vadd.f32 %v275_v38, %v249_v41 }
 0x1ed   :  { %vm259_vm3 = vcmp.gt.f32.partialorder %v255_v40, 0.0  ;;  %v261_v43 = vmul.f32 0.1, %v255_v40 }
 0x1ee   :  { %vm258_vm4 = vcmp.gt.f32.partialorder %v250_v42, 0.0  ;;  %v260_v44 = vmul.f32 0.1, %v250_v42 }
 0x1ef   :  { %v263_v45 = vsel %vm259_vm3, %v255_v40, %v261_v43 }
 0x1f0   :  { %265 = vst [vmem:[%s557_s5 + $0x8] sm:$0xff] %v263_v45  ;;  %v262_v46 = vsel %vm258_vm4, %v250_v42, %v260_v44 }
 0x1f1   :  { %264 = vst [vmem:[%s557_s5] sm:$0xff] %v262_v46 }
 0x1f2   :  { %270 = vsyncpa [#allocation3], 1 }
 0x1f3   :  { %271 = vsyncpa [#allocation5], 1 }

</bundles_post_ra>
